<compile_context>
chip_gen: v7x
topology: tpu7x:2x2x1
jax: 0.10.0
libtpu: 0.0.40
codegen_flags: <defaults>
</compile_context>

<pallas_src>
import functools

import jax
import jax.numpy as jnp
from jax.experimental import pallas as pl
from jax.experimental.pallas import tpu as pltpu

KSIZE = 7        # module: kernel = 7
PAD = 3          # module: padding = 3 if kernel == 7
NUM_ACC = 4      # independent partial accumulators per output map (VALU ILP)


def _round_up(x, m):
    return ((x + m - 1) // m) * m


# ---------------------------------------------------------------------------
# Kernel 1: streamed channel reduction  x (2, C, H, W) -> pooled (2, 2, H, W)
#           pooled[0] = mean over C, pooled[1] = max over C   (f32)
# ---------------------------------------------------------------------------
def _channel_reduce_kernel(x_ref, o_ref, *, rem, inv_c):
    """Grid = (h_tiles ["parallel"], c_steps ["arbitrary"]).

    x_ref : VMEM (2, c_tile, h_tile, W)  streamed window of x (native dtype)
    o_ref : VMEM (2, 2, h_tile, W) f32   resident accumulator (0: sum, 1: max)
    """
    c_step = pl.program_id(1)
    n_c = pl.num_programs(1)
    xb = x_ref[...]                               # native dtype; no full f32 copy

    def reduce_block(blk):
        s = jnp.sum(blk, axis=1, dtype=jnp.float32)    # f32 accumulation
        m = jnp.max(blk, axis=1).astype(jnp.float32)   # max in native dtype
        return s, m

    def init(blk):
        s, m = reduce_block(blk)
        o_ref[0] = s
        o_ref[1] = m

    def update(blk):
        s, m = reduce_block(blk)
        o_ref[0] = o_ref[0] + s
        o_ref[1] = jnp.maximum(o_ref[1], m)

    if rem == 0:
        @pl.when(c_step == 0)
        def _():
            init(xb)

        @pl.when(c_step > 0)
        def _():
            update(xb)
    else:
        # cdiv grid: only the first `rem` channels of the ragged last block are
        # valid (the DMA'd tail past C is undefined and must be ignored).
        last = n_c - 1

        @pl.when(c_step == 0)                     # never the ragged block (n_c >= 2)
        def _():
            init(xb)

        @pl.when(jnp.logical_and(c_step > 0, c_step < last))
        def _():
            update(xb)

        @pl.when(c_step == last)
        def _():
            update(xb[:, :rem])

    @pl.when(c_step == n_c - 1)
    def _():
        o_ref[0] = o_ref[0] * inv_c               # running sum -> mean, once


# ---------------------------------------------------------------------------
# Kernel 2: 7x7 "same" conv over the pooled maps + sigmoid, row-chunked.
# ---------------------------------------------------------------------------
def _conv_sigmoid_kernel(w_ref, pmap_hbm, o_ref, buf, sem, *, rows):
    """Grid = (H // rows,) ["parallel"].

    w_ref    : SMEM f32[2*7*7]   flattened Conv2d weight, layout [n, kh, kw]
    pmap_hbm : HBM (2, 2, H + 2*PAD, W_pad) f32   zero-padded pooled maps
               [k = {0: mean, 1: max}, n = original batch, row, lane]
    o_ref    : VMEM (2, rows, W_pad) f32          lane-padded output chunk
    buf      : VMEM (2, 2, rows + 2*PAD, W_pad) f32   row chunk + conv halo
    sem      : DMA semaphore
    """
    r = pl.program_id(0)
    start = r * rows
    if rows % 8 == 0:
        start = pl.multiple_of(start, 8)
    cp = pltpu.make_async_copy(
        pmap_hbm.at[:, :, pl.ds(start, rows + 2 * PAD), :], buf, sem)
    cp.start()
    cp.wait()

    w_pad = buf.shape[-1]
    # out[k,h,w] = sigmoid(sum_{n,i,j} w[0,n,i,j] * pooled_k[n, h+i-3, w+j-3])
    # Column-wise restructure:
    #   r_{k,n,j}[h,w] = sum_i w[0,n,i,j] * buf[k, n, h+i, w]    (sublane slices)
    #   out_k          = sum_{n,j} lane_roll(r_{k,n,j}, PAD - j) (28 XLU rolls)
    acc = [[None] * NUM_ACC for _ in range(2)]    # acc[k][slot]
    for n in range(2):                            # conv in-channels == orig batch
        # kernel-row (sublane) shifts: static slices of the padded chunk.
        # TODO(synk): could become one aligned load + sublane pltpu.roll per i
        # if the (off-critical-path) conv ever shows up in a profile.
        rows_kn = [[buf[k, n, i:i + rows, :] for i in range(KSIZE)]
                   for k in range(2)]
        for j in range(KSIZE):
            # each weight is read from SMEM once and reused for both maps
            c0 = w_ref[n * KSIZE * KSIZE + j]                     # i = 0
            r_avg = c0 * rows_kn[0][0]
            r_max = c0 * rows_kn[1][0]
            for i in range(1, KSIZE):
                ci = w_ref[n * KSIZE * KSIZE + i * KSIZE + j]
                r_avg = r_avg + ci * rows_kn[0][i]
                r_max = r_max + ci * rows_kn[1][i]
            # kernel-column (lane) shift on the XLU; the zero lanes >= W make
            # the rotation equivalent to the conv's zero padding (needs
            # W_pad >= W + PAD, asserted in the wrapper).
            sh = (PAD - j) % w_pad
            if sh:
                r_avg = pltpu.roll(r_avg, sh, axis=1)
                r_max = pltpu.roll(r_max, sh, axis=1)
            slot = j % NUM_ACC
            acc[0][slot] = r_avg if acc[0][slot] is None else acc[0][slot] + r_avg
            acc[1][slot] = r_max if acc[1][slot] is None else acc[1][slot] + r_max

    for k in range(2):
        conv = acc[k][0]
        for part in acc[k][1:]:
            if part is not None:
                conv = conv + part
        # Exact sigmoid (exp on the EUP + exact reciprocal).  approx=True would
        # also route the divide to the EUP but perturbs results past the 1e-5
        # reference tolerance; this runs once per chunk, off the critical path.
        o_ref[k, :, :] = pl.reciprocal(1.0 + jnp.exp(-conv), approx=False)


# ---------------------------------------------------------------------------
# Tiling helpers
# ---------------------------------------------------------------------------
def _vmem_limit_bytes():
    """Generation-aware scoped-VMEM limit (<= 75% of physical, capped)."""
    phys = 64 * 1024 * 1024                       # conservative default (v7x/TC)
    try:
        info = pltpu.get_tpu_info()
        phys = int(getattr(info, "vmem_capacity_bytes", phys))
    except Exception:                             # best effort: keep the default
        pass
    return int(min(phys * 3 // 4, 96 * 1024 * 1024))


def _pick_row_tile(H, max_rows, prefer_split=False):
    """Largest multiple-of-8 divisor of H that is <= cap; else H (full dim)."""
    divs = [d for d in range(8, H + 1, 8) if H % d == 0]
    if not divs:
        return H
    cap = max_rows
    if prefer_split:
        cap = min(cap, max(8, H // 2))            # >= 2 row tiles when possible
    fitting = [d for d in divs if d <= cap]
    return max(fitting) if fitting else min(divs)


def _pick_c_tile(C, h_tile, W, itemsize, vmem_limit, num_in_buffers=3):
    """Largest channel block whose in-flight input buffers plus the resident
    pooled-output block stay inside the scoped-VMEM limit (with headroom)."""
    out_bytes = 2 * (2 * 2 * h_tile * W * 4)      # double-buffered f32 output
    headroom = 4 * 1024 * 1024
    budget = max(vmem_limit - out_bytes - headroom, 1 * 1024 * 1024)
    per_channel = 2 * h_tile * W * itemsize       # one channel, both batch rows
    c_tile = budget // (num_in_buffers * per_channel)
    return int(max(1, min(C, c_tile)))


# ---------------------------------------------------------------------------
# Wrapper
# ---------------------------------------------------------------------------
def spatial_attention(x, weight, *, c_tile=None, h_tile=None, conv_rows=None):
    """x: (2, C, H, W) float, weight: (1, 2, 7, 7) float -> (1, 2, H, W) f32."""
    N, C, H, W = x.shape
    assert N == 2, "module's transpose(0,1) requires batch == conv in_channels == 2"
    assert weight.shape == (1, 2, KSIZE, KSIZE)

    vmem_limit = _vmem_limit_bytes()

    # ---- pass 1: channel mean / max, row-parallel, channel-streamed --------
    if h_tile is None:
        h_tile = _pick_row_tile(H, 256, prefer_split=True)
    else:
        h_tile = int(h_tile)
        assert H % h_tile == 0 and (h_tile % 8 == 0 or h_tile == H), \
            "h_tile must divide H and be a multiple of 8 (or equal H)"
    if c_tile is None:
        c_tile = _pick_c_tile(C, h_tile, W, jnp.dtype(x.dtype).itemsize, vmem_limit)
    else:
        c_tile = max(1, min(int(c_tile), C))
    num_c_steps = pl.cdiv(C, c_tile)              # ragged last block handled in-kernel
    rem = C % c_tile

    in_spec_kwargs = {}
    if num_c_steps >= 4:
        # many short channel steps: deepen the input pipeline to hide DMA jitter
        in_spec_kwargs["pipeline_mode"] = pl.Buffered(3)
    x_spec = pl.BlockSpec((2, c_tile, h_tile, W), lambda h, c: (0, c, h, 0),
                          **in_spec_kwargs)

    pooled = pl.pallas_call(
        functools.partial(_channel_reduce_kernel, rem=rem, inv_c=1.0 / C),
        out_shape=jax.ShapeDtypeStruct((2, 2, H, W), jnp.float32),
        grid_spec=pltpu.PrefetchScalarGridSpec(
            num_scalar_prefetch=0,
            grid=(H // h_tile, num_c_steps),
            in_specs=[x_spec],
            out_specs=pl.BlockSpec((2, 2, h_tile, W), lambda h, c: (0, 0, h, 0)),
        ),
        compiler_params=pltpu.CompilerParams(
            # H row tiles are independent -> second TensorCore on v7x; the
            # channel axis is the (resident-accumulator) reduction.
            dimension_semantics=("parallel", "arbitrary"),
            vmem_limit_bytes=vmem_limit,
        ),
    )(x)

    # ---- pass 2: 7x7 "same" conv + sigmoid on the tiny pooled maps ---------
    W_pad = _round_up(W + 2 * PAD, 128)           # lane-dense working width
    assert W_pad >= W + PAD, "lane-roll zero padding needs W_pad >= W + PAD"

    if conv_rows is None:
        conv_rows = _pick_row_tile(H, 128)
    else:
        conv_rows = int(conv_rows)
        assert H % conv_rows == 0 and (conv_rows % 8 == 0 or conv_rows == H), \
            "conv_rows must divide H and be a multiple of 8 (or equal H)"

    # One cheap XLA pad of the small pooled maps: +-PAD zero rows for the conv
    # halo and zero lanes out to W_pad so the in-kernel lane rolls see zeros.
    padded = jnp.pad(pooled, ((0, 0), (0, 0), (PAD, PAD), (0, W_pad - W)))

    w_flat = weight.astype(jnp.float32).reshape(-1)    # (98,), layout [n, kh, kw]

    out_padded = pl.pallas_call(
        functools.partial(_conv_sigmoid_kernel, rows=conv_rows),
        out_shape=jax.ShapeDtypeStruct((2, H, W_pad), jnp.float32),
        grid_spec=pltpu.PrefetchScalarGridSpec(
            num_scalar_prefetch=1,                # conv weights -> SMEM scalars
            grid=(H // conv_rows,),
            in_specs=[pl.BlockSpec(memory_space=pl.ANY)],   # manual halo DMA
            out_specs=pl.BlockSpec((2, conv_rows, W_pad), lambda r, w: (0, r, 0)),
            scratch_shapes=[
                pltpu.VMEM((2, 2, conv_rows + 2 * PAD, W_pad), jnp.float32),
                pltpu.SemaphoreType.DMA(()),
            ],
        ),
        compiler_params=pltpu.CompilerParams(
            dimension_semantics=("parallel",),    # row chunks are independent
            vmem_limit_bytes=vmem_limit,
        ),
    )(w_flat, padded)

    # Strip the lane padding and restore the module's (1, 2, H, W) output.
    return out_padded[:, :, :W][jnp.newaxis]


def reference(x, weight):
    """Pure-JAX replica of the PyTorch forward, for verification."""
    avg = jnp.mean(x, axis=1, keepdims=True)
    mx = jnp.max(x, axis=1, keepdims=True)
    y = jnp.concatenate([avg, mx], axis=1)              # (N, 2, H, W)
    y = jnp.transpose(y, (1, 0, 2, 3))                  # (2, N, H, W)
    z = jax.lax.conv_general_dilated(
        y, weight, window_strides=(1, 1),
        padding=[(PAD, PAD), (PAD, PAD)],
        dimension_numbers=("NCHW", "OIHW", "NCHW"))
    z = jnp.transpose(z, (1, 0, 2, 3))                  # (1, 2, H, W)
    return jax.nn.sigmoid(z)


if __name__ == "__main__":
    key = jax.random.PRNGKey(0)
    kx, kw = jax.random.split(key)

    # Batch MUST be 2 for this module's forward to be well-defined (see above).
    B, C, H, W = 2, 8, 16, 16
    x = jax.random.normal(kx, (B, C, H, W), dtype=jnp.float32)

    # Deterministic Conv2d(2, 1, 7, bias=False)-style uniform weight init.
    fan_in = 2 * KSIZE * KSIZE
    bound = 1.0 / (fan_in ** 0.5)
    weight = jax.random.uniform(kw, (1, 2, KSIZE, KSIZE), jnp.float32,
                                minval=-bound, maxval=bound)

    ref = reference(x, weight)

    # Auto-tiled path (budget-aware c_tile, row-parallel reduction).
    out = spatial_attention(x, weight)
    out = jax.block_until_ready(out)
    assert out.shape == (1, 2, H, W)
    assert jnp.allclose(out, ref, atol=1e-5, rtol=1e-5), "auto-tiled mismatch"

    # Forced small tiles: 2 "parallel" row tiles, 3 channel steps with a ragged
    # last block (C=8, c_tile=3), and a row-chunked conv (2 chunks of 8 rows).
    out2 = spatial_attention(x, weight, c_tile=3, h_tile=8, conv_rows=8)
    out2 = jax.block_until_ready(out2)
    assert jnp.allclose(out2, ref, atol=1e-5, rtol=1e-5), "tiled/ragged mismatch"

    print("KERNEL_OK")
</pallas_src>

<mosaic_0001>
module attributes {stable_mosaic.version = 11 : i64} {
  func.func @_channel_reduce_kernel(%arg0: i32, %arg1: i32, %arg2: memref<2x8x8x16xf32, #tpu.memory_space<vmem>>, %arg3: memref<2x2x8x16xf32, #tpu.memory_space<vmem>>) attributes {dimension_semantics = [#tpu.dimension_semantics<parallel>, #tpu.dimension_semantics<arbitrary>], iteration_bounds = array<i64: 2, 1>, scalar_prefetch = 0 : i64, scratch_operands = 0 : i64, tpu.core_type = #tpu.core_type<tc>, window_params = [{transform_indices = @transform_0, window_bounds = array<i64: 2, 8, 8, 16>}, {transform_indices = @transform_1, window_bounds = array<i64: 2, 2, 8, 16>}]} {
    %c0 = arith.constant 0 : index
    %c0_0 = arith.constant 0 : index
    %c0_1 = arith.constant 0 : index
    %c0_2 = arith.constant 0 : index
    %0 = vector.load %arg2[%c0, %c0_0, %c0_1, %c0_2] : memref<2x8x8x16xf32, #tpu.memory_space<vmem>>, vector<2x8x8x16xf32>
    %c0_i32 = arith.constant 0 : i32
    %1 = arith.cmpi eq, %arg1, %c0_i32 : i32
    %2 = arith.extui %1 : i1 to i32
    %c0_i32_3 = arith.constant 0 : i32
    %3 = arith.cmpi ne, %2, %c0_i32_3 : i32
    scf.if %3 {
      %cst = arith.constant dense<0.000000e+00> : vector<2x8x16xf32>
      %10 = vector.multi_reduction <add>, %0, %cst [1] : vector<2x8x8x16xf32> to vector<2x8x16xf32>
      %cst_8 = arith.constant dense<0xFF800000> : vector<2x8x16xf32>
      %11 = vector.multi_reduction <maximumf>, %0, %cst_8 [1] : vector<2x8x8x16xf32> to vector<2x8x16xf32>
      %c0_9 = arith.constant 0 : index
      %c0_10 = arith.constant 0 : index
      %c0_11 = arith.constant 0 : index
      %c0_12 = arith.constant 0 : index
      %12 = vector.load %arg3[%c0_9, %c0_10, %c0_11, %c0_12] : memref<2x2x8x16xf32, #tpu.memory_space<vmem>>, vector<1x2x8x16xf32>
      %13 = vector.shape_cast %12 : vector<1x2x8x16xf32> to vector<2x8x16xf32>
      %14 = vector.shape_cast %10 : vector<2x8x16xf32> to vector<1x2x8x16xf32>
      tpu.vector_store %arg3[%c0_9, %c0_10, %c0_11, %c0_12], %14 {strides = array<i32>} : memref<2x2x8x16xf32, #tpu.memory_space<vmem>>, vector<1x2x8x16xf32>,
      %c1 = arith.constant 1 : index
      %c0_13 = arith.constant 0 : index
      %c0_14 = arith.constant 0 : index
      %c0_15 = arith.constant 0 : index
      %15 = vector.load %arg3[%c1, %c0_13, %c0_14, %c0_15] : memref<2x2x8x16xf32, #tpu.memory_space<vmem>>, vector<1x2x8x16xf32>
      %16 = vector.shape_cast %15 : vector<1x2x8x16xf32> to vector<2x8x16xf32>
      %17 = vector.shape_cast %11 : vector<2x8x16xf32> to vector<1x2x8x16xf32>
      tpu.vector_store %arg3[%c1, %c0_13, %c0_14, %c0_15], %17 {strides = array<i32>} : memref<2x2x8x16xf32, #tpu.memory_space<vmem>>, vector<1x2x8x16xf32>,
    } else {
    }
    %c0_i32_4 = arith.constant 0 : i32
    %4 = arith.cmpi sgt, %arg1, %c0_i32_4 : i32
    %5 = arith.extui %4 : i1 to i32
    %c0_i32_5 = arith.constant 0 : i32
    %6 = arith.cmpi ne, %5, %c0_i32_5 : i32
    scf.if %6 {
      %cst = arith.constant dense<0.000000e+00> : vector<2x8x16xf32>
      %10 = vector.multi_reduction <add>, %0, %cst [1] : vector<2x8x8x16xf32> to vector<2x8x16xf32>
      %cst_8 = arith.constant dense<0xFF800000> : vector<2x8x16xf32>
      %11 = vector.multi_reduction <maximumf>, %0, %cst_8 [1] : vector<2x8x8x16xf32> to vector<2x8x16xf32>
      %c0_9 = arith.constant 0 : index
      %c0_10 = arith.constant 0 : index
      %c0_11 = arith.constant 0 : index
      %c0_12 = arith.constant 0 : index
      %12 = vector.load %arg3[%c0_9, %c0_10, %c0_11, %c0_12] : memref<2x2x8x16xf32, #tpu.memory_space<vmem>>, vector<1x2x8x16xf32>
      %13 = vector.shape_cast %12 : vector<1x2x8x16xf32> to vector<2x8x16xf32>
      %14 = arith.addf %13, %10 : vector<2x8x16xf32>
      %c0_13 = arith.constant 0 : index
      %c0_14 = arith.constant 0 : index
      %c0_15 = arith.constant 0 : index
      %c0_16 = arith.constant 0 : index
      %15 = vector.load %arg3[%c0_13, %c0_14, %c0_15, %c0_16] : memref<2x2x8x16xf32, #tpu.memory_space<vmem>>, vector<1x2x8x16xf32>
      %16 = vector.shape_cast %15 : vector<1x2x8x16xf32> to vector<2x8x16xf32>
      %17 = vector.shape_cast %14 : vector<2x8x16xf32> to vector<1x2x8x16xf32>
      tpu.vector_store %arg3[%c0_13, %c0_14, %c0_15, %c0_16], %17 {strides = array<i32>} : memref<2x2x8x16xf32, #tpu.memory_space<vmem>>, vector<1x2x8x16xf32>,
      %c1 = arith.constant 1 : index
      %c0_17 = arith.constant 0 : index
      %c0_18 = arith.constant 0 : index
      %c0_19 = arith.constant 0 : index
      %18 = vector.load %arg3[%c1, %c0_17, %c0_18, %c0_19] : memref<2x2x8x16xf32, #tpu.memory_space<vmem>>, vector<1x2x8x16xf32>
      %19 = vector.shape_cast %18 : vector<1x2x8x16xf32> to vector<2x8x16xf32>
      %20 = arith.maximumf %19, %11 : vector<2x8x16xf32>
      %c1_20 = arith.constant 1 : index
      %c0_21 = arith.constant 0 : index
      %c0_22 = arith.constant 0 : index
      %c0_23 = arith.constant 0 : index
      %21 = vector.load %arg3[%c1_20, %c0_21, %c0_22, %c0_23] : memref<2x2x8x16xf32, #tpu.memory_space<vmem>>, vector<1x2x8x16xf32>
      %22 = vector.shape_cast %21 : vector<1x2x8x16xf32> to vector<2x8x16xf32>
      %23 = vector.shape_cast %20 : vector<2x8x16xf32> to vector<1x2x8x16xf32>
      tpu.vector_store %arg3[%c1_20, %c0_21, %c0_22, %c0_23], %23 {strides = array<i32>} : memref<2x2x8x16xf32, #tpu.memory_space<vmem>>, vector<1x2x8x16xf32>,
    } else {
    }
    %c0_i32_6 = arith.constant 0 : i32
    %7 = arith.cmpi eq, %arg1, %c0_i32_6 : i32
    %8 = arith.extui %7 : i1 to i32
    %c0_i32_7 = arith.constant 0 : i32
    %9 = arith.cmpi ne, %8, %c0_i32_7 : i32
    scf.if %9 {
      %c0_8 = arith.constant 0 : index
      %c0_9 = arith.constant 0 : index
      %c0_10 = arith.constant 0 : index
      %c0_11 = arith.constant 0 : index
      %10 = vector.load %arg3[%c0_8, %c0_9, %c0_10, %c0_11] : memref<2x2x8x16xf32, #tpu.memory_space<vmem>>, vector<1x2x8x16xf32>
      %11 = vector.shape_cast %10 : vector<1x2x8x16xf32> to vector<2x8x16xf32>
      %cst = arith.constant 1.250000e-01 : f32
      %12 = vector.broadcast %cst : f32 to vector<2x8x16xf32>
      %13 = arith.mulf %11, %12 : vector<2x8x16xf32>
      %c0_12 = arith.constant 0 : index
      %c0_13 = arith.constant 0 : index
      %c0_14 = arith.constant 0 : index
      %c0_15 = arith.constant 0 : index
      %14 = vector.load %arg3[%c0_12, %c0_13, %c0_14, %c0_15] : memref<2x2x8x16xf32, #tpu.memory_space<vmem>>, vector<1x2x8x16xf32>
      %15 = vector.shape_cast %14 : vector<1x2x8x16xf32> to vector<2x8x16xf32>
      %16 = vector.shape_cast %13 : vector<2x8x16xf32> to vector<1x2x8x16xf32>
      tpu.vector_store %arg3[%c0_12, %c0_13, %c0_14, %c0_15], %16 {strides = array<i32>} : memref<2x2x8x16xf32, #tpu.memory_space<vmem>>, vector<1x2x8x16xf32>,
    } else {
    }
    return
  }
  func.func @transform_0(%arg0: i32, %arg1: i32) -> (i32, i32, i32, i32) {
    %c0_i32 = arith.constant 0 : i32
    %c0_i32_0 = arith.constant 0 : i32
    %c0_i32_1 = arith.constant 0 : i32
    return %c0_i32, %arg1, %arg0, %c0_i32_0 : i32, i32, i32, i32
  }
  func.func @transform_1(%arg0: i32, %arg1: i32) -> (i32, i32, i32, i32) {
    %c0_i32 = arith.constant 0 : i32
    %c0_i32_0 = arith.constant 0 : i32
    %c0_i32_1 = arith.constant 0 : i32
    %c0_i32_2 = arith.constant 0 : i32
    return %c0_i32, %c0_i32_0, %arg0, %c0_i32_1 : i32, i32, i32, i32
  }
}

</mosaic_0001>

<bundles_post_ra>
// kernel: tpu_custom_call.1
= control target key start
LH: loop header
LB: loop body
LE: loop exit
PB: predicated region body
PF: predicated region fallthrough
CT: control target
= control target key end

     0   :  { %6 = vsyncpa [#allocation3], 0  ;;  %s871_s0 = inlined_call_operand.hbm [shape: f32[2,8,16,16], index: 0, kind: input, shape index: {}]   ;;  %s872_s1 = inlined_call_operand.hbm [shape: f32[2,2,16,16], index: 1, kind: output, shape index: {}]  }
   0x1   :  { %8 = vsyncpa [#allocation3 + $0x1], 0 }
   0x2   :  { %9 = vsyncpa [#allocation4], 0 }
   0x3   :  { %11 = vsyncpa [#allocation4 + $0x1], 0  ;;  %s641_s6 = smov 0   ;;  %s643_s7 = smov 0  }
   0x4   :  { %s645_s8 = smov 0   ;;  %s647_s9 = smov 0  }
   0x5   :  { %s649_s10 = smov 0   ;;  %s651_s11 = smov 0  }
   0x6 LB: > { %s422_s12 = sadd.s32 4294967295, %s621_s11   ;;  %s423_s13 = sadd.s32 4294967294, %s621_s11   ;;  %s621_s11 = sphi %s651_s11, %s17_s11   ;;  %s617_s10 = sphi %s649_s10, %s886_s10   ;;  %s613_s9 = sphi %s647_s9, %s885_s9   ;;  %s609_s8 = sphi %s645_s8, %s884_s8   ;;  %s605_s7 = sphi %s643_s7, %s883_s7   ;;  %s601_s6 = sphi %s641_s6, %s882_s6  }
   0x7   : > { %s29_s14 = sadd.s32 1, %s617_s10  ;;  %s38_s15 = sadd.s32 1, %s609_s8 }
   0x8   : > { %p31_p0 = scmp.ge.s32.totalorder %s29_s14, 2  ;;  %p45_p1 = scmp.ne.s32.totalorder %s609_s8, %s605_s7 }
   0x9   : > { %p46_p2 = scmp.eq.s32.totalorder %s621_s11, 0  ;;  %p51_p3 = scmp.ne.s32.totalorder %s605_s7, %s601_s6 }
   0xa   : > { %s888_s14 = smov (%p31_p0, %s29_s14), 0  ;;  %p52_p5 = scmp.eq.s32.totalorder %s422_s12, 0 }
   0xb   : > { %p682_p4 = por %p46_p2, %p45_p1  ;;  %s34_s17 = ssub.s32 %s617_s10, %s888_s14 }
   0xc   : > { %p75_p6 = scmp.eq.s32.totalorder %s422_s12, 1  ;;  %p36_p7 = scmp.eq.s32.totalorder %s34_s17, 0 }
   0xd   : > { %p688_p8 = por %p52_p5, %p51_p3  ;;  %p81_p10 = scmp.eq.s32.totalorder %s423_s13, 1 }
   0xe   : > { %p692_p9 = por %p75_p6, %p45_p1  ;;  %p453_p13 = scmp.lt.s32.totalorder %s621_s11, 2 }
   0xf   : > { %s697_s20 = scalar_select %p36_p7, %s609_s8, %s38_s15  }
  0x10   : > { %s876_s19 = scalar_select %p692_p9, 1, 0 }
  0x11   : > { %p699_p11 = por %p81_p10, %p51_p3  ;;  %s101_s22 = sand.u32 1, %s609_s8  }
  0x12   : > { %s426_s23 = sshll.u32 %s101_s22, 7  ;;  %s427_s24 = sshll.u32 %s617_s10, 7 }
  0x13   : > { %s877_s21 = scalar_select %p699_p11, 1, 0 }
  0x14   : > { %s710_s27 = scalar_lea.hbm %s871_s0, %s427_s24  ;;  %s105_s28 = scalar_lea.vmem [#allocation2], %s426_s23 }
  0x15   : > { %s114_s29 = sshll.u32 %s105_s28, 4  ;;  %p716_p0 = pnand %p453_p13, %p682_p4  ;;  %s712_s29 = int_to_ptr.vmem [resolvable:$true] %s114_s29 }
  0x16   : > { %s720_s2 = scalar_lea.sflag [#allocation3], %s101_s22  ;;  %s509_s3 = scalar_lea.hbm %s710_s27, 2048 }
  0x17   : > { %p510_p1 = scmp.ne.s32.totalorder %s710_s27, %s509_s3  ;;  %p511_p2 = pneg %p716_p0 }
  0x18   : > { %s514_s12 = scalar_lea.hbm %s871_s0, 4096  ;;  %p515_p4 = scmp.lt.u32.totalorder %s710_s27, %s871_s0 }
  0x19   : > { %p512_p3 = pnand %p511_p2, %p510_p1  ;;  %p516_p6 = scmp.lt.u32.totalorder %s514_s12, %s509_s3 }
  0x1a   : > { %p518_p10 = scmp.lt.u32.totalorder %s509_s3, %s710_s27 }
  0x1b   : > { %p513_p5 = pneg %p512_p3  ;;  %p517_p7 = por %p516_p6, %p515_p4 }
  0x1d   : > { %p519_p13 = por %p518_p10, %p517_p7 }
  0x1f   : > { %p520_p12 = pnand %p519_p13, %p513_p5 }
  0x21   : > { %523 = shalt.err (!%p520_p12)
}
  0x22   : > { %s524_s16 = scalar_lea.vmem %s712_s29, 2048  ;;  %s623_s17 = smov [#allocation2]  }
  0x23   : > { %p525_p1 = scmp.ne.s32.totalorder %s712_s29, %s524_s16  ;;  %s529_s22 = sshll.u32 %s623_s17, 4  ;;  %s530_s22 = int_to_ptr.vmem [resolvable:$false] %s529_s22 }
  0x24   : > { %s531_s23 = scalar_lea.vmem %s530_s22, 4096  ;;  %p532_p9 = scmp.lt.s32.totalorder %s712_s29, %s530_s22 }
  0x25   : > { %p527_p3 = pnand %p525_p1, %p511_p2  ;;  %p533_p4 = scmp.lt.s32.totalorder %s531_s23, %s524_s16 }
  0x27   : > { %p528_p11 = pneg %p527_p3  ;;  %p534_p6 = por %p533_p4, %p532_p9 }
  0x29   : > { %p535_p7 = pnand %p534_p6, %p528_p11 }
  0x2b   : > { %538 = shalt.err (!%p535_p7)
}
  0x2c   : > { %s624_s24 = smov 256   ;;  %s625_s25 = smov 128  }
  0x2d   : > { %s626_s26 = smov 8   ;;  %p428_p12 = scmp.ge.s32.totalorder %s621_s11, 1 }
  0x2e   : > { %448 = dma.hbm_to_vmem [thread:$0]  (!%p716_p0), %s710_s27, 2048, %s712_s29, %s720_s2, %s624_s24, %s625_s25, %s626_s26  }
  0x2f   : > { %p122_p2 = scmp.lt.s32.totalorder %s621_s11, 3 }
  0x31   : > { %p123_p5 = pnand %p428_p12, %p122_p2 }
  0x32   : > { %s751_s28 = sand.u32 (!%p123_p5), 1, %s605_s7  }
  0x33   : > { %126 = sbr.rel (%p123_p5) target bundleno = 104 (0x68), region = 24  ;;  %s429_s3 = sshll.u32 (!%p123_p5), %s751_s28, 7 }
  0x34   : > { %s129_s4 = scalar_lea.sflag (!%p123_p5), [#allocation3], %s751_s28  ;;  %s755_s5 = scalar_lea.vmem (!%p123_p5), [#allocation2], %s429_s3 }
  0x3a   : > { %592 = dma.done.wait (%p688_p8), %s129_s4, 2048  }
  0x3b   : > { %594 = vsyncadd (%p688_p8), %s129_s4, 4294965248  ;;  %vm172_vm0 = vcmask 130048   ;;  %v152_v0 = vld [vmem:[%s755_s5] sm:$0xff]  ;;  %v153_v1 = vld [vmem:[%s755_s5 + $0x8] sm:$0xff]  ;;  %s430_s18 = sshll.u32 %s751_s28, 5  ;;  %s438_s29 = sshll.u32 %s613_s9, 7 }
  0x3c   : > { %v154_v2 = vld [vmem:[%s755_s5 + $0x10] sm:$0xff]  ;;  %v155_v3 = vld [vmem:[%s755_s5 + $0x18] sm:$0xff]  ;;  %v156_v4 = vld [vmem:[%s755_s5 + $0x20] sm:$0xff]  ;;  %v173_v6 = vsel %vm172_vm0, %v152_v0, 0.0  ;;  %v174_v7 = vsel %vm172_vm0, %v153_v1, 0.0  ;;  %v203_v36 = vsel %vm172_vm0, %v152_v0, -inf  ;;  %s818_s13 = scalar_lea.hbm %s872_s1, %s438_s29 }
  0x3d   : > { %v157_v5 = vld [vmem:[%s755_s5 + $0x28] sm:$0xff]  ;;  %v176_v8 = vsel %vm172_vm0, %v154_v2, 0.0  ;;  %v158_v9 = vld [vmem:[%s755_s5 + $0x30] sm:$0xff]  ;;  %v159_v10 = vld [vmem:[%s755_s5 + $0x38] sm:$0xff]  ;;  %v175_v11 = vadd.f32 %v174_v7, %v173_v6  ;;  %v178_v12 = vsel %vm172_vm0, %v155_v3, 0.0  ;;  %v180_v13 = vsel %vm172_vm0, %v156_v4, 0.0 }
  0x3e   : > { %v182_v14 = vsel %vm172_vm0, %v157_v5, 0.0  ;;  %v160_v15 = vld [vmem:[%s755_s5 + $0x40] sm:$0xff]  ;;  %v184_v16 = vsel %vm172_vm0, %v158_v9, 0.0  ;;  %v186_v17 = vsel %vm172_vm0, %v159_v10, 0.0  ;;  %v161_v18 = vld [vmem:[%s755_s5 + $0x48] sm:$0xff]  ;;  %v162_v19 = vld [vmem:[%s755_s5 + $0x50] sm:$0xff] }
  0x3f   : > { %v163_v20 = vld [vmem:[%s755_s5 + $0x58] sm:$0xff]  ;;  %v188_v21 = vsel %vm172_vm0, %v160_v15, 0.0  ;;  %v177_v22 = vadd.f32 %v176_v8, %v175_v11  ;;  %v164_v23 = vld [vmem:[%s755_s5 + $0x60] sm:$0xff]  ;;  %v165_v24 = vld [vmem:[%s755_s5 + $0x68] sm:$0xff]  ;;  %v189_v26 = vsel %vm172_vm0, %v161_v18, 0.0  ;;  %v191_v27 = vsel %vm172_vm0, %v162_v19, 0.0 }
  0x40   : > { %v166_v25 = vld [vmem:[%s755_s5 + $0x70] sm:$0xff]  ;;  %v193_v28 = vsel %vm172_vm0, %v163_v20, 0.0  ;;  %v167_v29 = vld [vmem:[%s755_s5 + $0x78] sm:$0xff]  ;;  %v190_v30 = vadd.f32 %v189_v26, %v188_v21  ;;  %v195_v31 = vsel %vm172_vm0, %v164_v23, 0.0  ;;  %v197_v32 = vsel %vm172_vm0, %v165_v24, 0.0  ;;  %s150_s27 = scalar_lea.vmem [#allocation5], %s430_s18 }
  0x41   : > { %v199_v33 = vsel %vm172_vm0, %v166_v25, 0.0  ;;  %v179_v34 = vadd.f32 %v178_v12, %v177_v22  ;;  %v201_v35 = vsel %vm172_vm0, %v167_v29, 0.0  ;;  %v204_v37 = vsel %vm172_vm0, %v153_v1, -inf  ;;  %s339_s30 = sshll.u32 %s150_s27, 4  ;;  %s327_s9 = scalar_lea.sflag [#allocation4], %s751_s28  ;;  %s821_s30 = int_to_ptr.vmem [resolvable:$true] %s339_s30 }
  0x42   : > { %v192_v38 = vadd.f32 %v191_v27, %v190_v30  ;;  %v205_v39 = vsel %vm172_vm0, %v154_v2, -inf  ;;  %v207_v40 = vsel %vm172_vm0, %v155_v3, -inf  ;;  %v209_v41 = vsel %vm172_vm0, %v156_v4, -inf  ;;  %s539_s15 = scalar_lea.vmem %s821_s30, 512  ;;  %p879_p9 = scmp.ne.s32.totalorder %s876_s19, 0 }
  0x43   : > { %v181_v42 = vadd.f32 %v180_v13, %v179_v34  ;;  %v206_v43 = vmax.f32 %v203_v36, %v205_v39  ;;  %v208_v44 = vmax.f32 %v204_v37, %v207_v40  ;;  %v211_v45 = vsel %vm172_vm0, %v157_v5, -inf  ;;  %p540_p8 = scmp.ne.s32.totalorder %s821_s30, %s539_s15  ;;  %s627_s16 = smov [#allocation5]  }
  0x44   : > { %v194_v46 = vadd.f32 %v193_v28, %v192_v38  ;;  %v213_v47 = vsel %vm172_vm0, %v158_v9, -inf  ;;  %v215_v48 = vsel %vm172_vm0, %v159_v10, -inf  ;;  %v218_v49 = vsel %vm172_vm0, %v160_v15, -inf  ;;  %s543_s17 = sshll.u32 %s627_s16, 4  ;;  %s544_s17 = int_to_ptr.vmem [resolvable:$false] %s543_s17 }
  0x45   : > { %v183_v50 = vadd.f32 %v182_v14, %v181_v42  ;;  %v210_v51 = vmax.f32 %v206_v43, %v209_v41  ;;  %v212_v52 = vmax.f32 %v208_v44, %v211_v45  ;;  %v219_v53 = vsel %vm172_vm0, %v161_v18, -inf  ;;  %p541_p11 = pnand %p540_p8, %p879_p9  ;;  %s545_s22 = scalar_lea.vmem %s544_s17, 1024 }
  0x46   : > { %v196_v54 = vadd.f32 %v195_v31, %v194_v46  ;;  %v220_v55 = vsel %vm172_vm0, %v162_v19, -inf  ;;  %v222_v56 = vsel %vm172_vm0, %v163_v20, -inf  ;;  %v224_v57 = vsel %vm172_vm0, %v164_v23, -inf  ;;  %p546_p10 = scmp.lt.s32.totalorder %s821_s30, %s544_s17  ;;  %p547_p13 = scmp.lt.s32.totalorder %s545_s22, %s539_s15 }
  0x47   : > { %v185_v58 = vadd.f32 %v184_v16, %v183_v50  ;;  %v214_v59 = vmax.f32 %v210_v51, %v213_v47  ;;  %v216_v60 = vmax.f32 %v212_v52, %v215_v48  ;;  %v221_v61 = vmax.f32 %v218_v49, %v220_v55  ;;  %p542_p0 = pneg %p541_p11 }
  0x48   : > { %v198_v62 = vadd.f32 %v197_v32, %v196_v54  ;;  %v223_v63 = vmax.f32 %v219_v53, %v222_v56  ;;  %v226_v0 = vsel %vm172_vm0, %v165_v24, -inf  ;;  %v228_v1 = vsel %vm172_vm0, %v166_v25, -inf  ;;  %p548_p1 = por %p547_p13, %p546_p10 }
  0x49   : > { %v187_v2 = vadd.f32 %v186_v17, %v185_v58  ;;  %v217_v3 = vmax.f32 %v214_v59, %v216_v60  ;;  %v225_v4 = vmax.f32 %v221_v61, %v224_v57  ;;  %v230_v5 = vsel %vm172_vm0, %v167_v29, -inf }
  0x4a   : > { %v200_v6 = vadd.f32 %v199_v33, %v198_v62  ;;  %v227_v7 = vmax.f32 %v223_v63, %v226_v0  ;;  %p549_p3 = pnand %p548_p1, %p542_p0 }
  0x4b   : > { %233 = vst.msk [vmem:[%s150_s27] sm:$0xff] %vm172_vm0, %v187_v2  ;;  %431 = vst.msk [vmem:[%s150_s27 + $0x10] sm:$0xff] %vm172_vm0, %v217_v3  ;;  %v229_v8 = vmax.f32 %v225_v4, %v228_v1 }
  0x4c   : > { %v202_v9 = vadd.f32 %v201_v35, %v200_v6  ;;  %v231_v10 = vmax.f32 %v227_v7, %v230_v5 }
  0x4e   : > { %234 = vst.msk [vmem:[%s150_s27 + $0x8] sm:$0xff] %vm172_vm0, %v202_v9  ;;  %v232_v11 = vmax.f32 %v229_v8, %v231_v10 }
  0x50   : > { %432 = vst.msk [vmem:[%s150_s27 + $0x18] sm:$0xff] %vm172_vm0, %v232_v11 }
  0x52   : > { %v319_v12 = vld [vmem:[%s150_s27] sm:$0xff] }
  0x53   : > { %v321_v13 = vmul.f32 0.125, %v319_v12 }
  0x55   : > { %324 = vst.msk [vmem:[%s150_s27] sm:$0xff] %vm172_vm0, %v321_v13  ;;  %v320_v14 = vld [vmem:[%s150_s27 + $0x8] sm:$0xff] }
  0x56   : > { %v322_v15 = vmul.f32 0.125, %v320_v14 }
  0x58   : > { %325 = vst.msk [vmem:[%s150_s27 + $0x8] sm:$0xff] %vm172_vm0, %v322_v15 }
  0x59   : > { %552 = shalt.err (!%p549_p3)
}
  0x5a   : > { %s553_s23 = scalar_lea.hbm %s818_s13, 512  ;;  %s557_s26 = scalar_lea.hbm %s872_s1, 1024 }
  0x5b   : > { %p554_p4 = scmp.ne.s32.totalorder %s818_s13, %s553_s23  ;;  %p558_p12 = scmp.lt.u32.totalorder %s818_s13, %s872_s1 }
  0x5c   : > { %p559_p2 = scmp.lt.u32.totalorder %s557_s26, %s553_s23  ;;  %p561_p8 = scmp.lt.u32.totalorder %s553_s23, %s818_s13 }
  0x5d   : > { %p555_p6 = pnand %p554_p4, %p879_p9 }
  0x5e   : > { %p560_p5 = por %p559_p2, %p558_p12 }
  0x5f   : > { %p556_p7 = pneg %p555_p6 }
  0x60   : > { %p562_p11 = por %p561_p8, %p560_p5 }
  0x62   : > { %p563_p0 = pnand %p562_p11, %p556_p7 }
  0x64   : > { %566 = shalt.err (!%p563_p0)
}
  0x65   : > { %s628_s5 = smov 128   ;;  %s629_s18 = smov 256  }
  0x66   : > { %s630_s27 = smov 8  }
  0x67   : > { %443 = dma.vmem_to_hbm [thread:$0]  (%p879_p9), %s821_s30, 512, %s818_s13, %s327_s9, %s628_s5, %s629_s18, %s630_s27  }
  0x68 PF: > { %s354_s29 = sand.u32 1, %s601_s6   ;;  %p880_p10 = scmp.ne.s32.totalorder %s877_s21, 0 }
  0x69   : > { %p881_p13 = scmp.ge.s32.totalorder %s621_s11, 2  ;;  %s355_s2 = scalar_lea.sflag [#allocation4], %s354_s29 }
  0x6b   : > { %p450_p1 = pnand %p881_p13, %p880_p10 }
  0x6d   : > { %596 = dma.done.wait (!%p450_p1), %s355_s2, 512  }
  0x6e   : > { %598 = vsyncadd (!%p450_p1), %s355_s2, 4294966784  ;;  %s17_s11 = sadd.s32 1, %s621_s11   ;;  %s882_s6 = smov %s605_s7 }
  0x6f   : > { %p14_p3 = scmp.ge.s32.totalorder %s17_s11, 4   ;;  %s883_s7 = smov %s609_s8 }
  0x70   : > { %s884_s8 = smov %s697_s20  ;;  %s885_s9 = smov %s617_s10 }
  0x71   : > { %s886_s10 = smov %s888_s14  ;;  %16 = sbr.rel (!%p14_p3) target bundleno = 6 (0x6), region = 83 }
  0x78   :  { %360 = vsyncpa [#allocation3], 1 }
  0x79   :  { %362 = vsyncpa [#allocation3 + $0x1], 1 }
  0x7a   :  { %363 = vsyncpa [#allocation4], 1 }
  0x7b   :  { %365 = vsyncpa [#allocation4 + $0x1], 1 }

</bundles_post_ra>
